<compile_context>
chip_gen: v5e
topology: v5e:2x2
jax: 0.10.0
libtpu: 0.0.40
codegen_flags: <defaults>
</compile_context>

<pallas_src>
import jax
import jax.numpy as jnp
from jax import lax
from jax.experimental import pallas as pl
from jax.experimental.pallas import tpu as pltpu


# --------------------------------------------------------------------------------
# VMEM budgeting
# --------------------------------------------------------------------------------
def _vmem_budget_bytes():
    """~75% of physical VMEM per TensorCore (headroom for compiler scratch/pipelines)."""
    try:
        cap = int(pltpu.get_tpu_info().vmem_capacity_bytes)
    except Exception:
        cap = 64 << 20  # conservative fallback (v7x-sized VMEM)
    return (cap * 3) // 4


def _choose_tile_hw(c, hw, elem_bytes, target_bytes):
    """Lane-dense (multiple-of-128) HW tile that never exceeds HW itself."""
    if hw <= 128:
        return int(hw)  # single full-extent block (block dim == array dim is legal)
    t = max(128, (target_bytes // max(1, c * elem_bytes)) // 128 * 128)
    return int(min(t, (hw // 128) * 128))


# --------------------------------------------------------------------------------
# Fused single-pass path: one (C, HW) slab per image, everything in one kernel.
# --------------------------------------------------------------------------------
def _scse_fused(x_flat, params, inv_hw, vmem_budget):
    N, C, HW = x_flat.shape
    mid = params["w1"].shape[0]
    dtype = x_flat.dtype

    def kernel(w1_ref, b1_ref, w2_ref, b2_ref, ws_ref, bs_ref, x_ref, o_ref):
        x = x_ref[...]                                                 # (C, HW) native dtype

        # cSE: global average pool + tiny MLP, all in f32 (sums accumulate in f32).
        mean = jnp.sum(x.astype(jnp.float32), axis=-1, keepdims=True) * inv_hw      # (C, 1)
        h = jnp.maximum(
            jnp.dot(w1_ref[...], mean, preferred_element_type=jnp.float32)
            + b1_ref[...], 0.0)                                        # (mid, 1)
        c_att = jax.nn.sigmoid(
            jnp.dot(w2_ref[...], h, preferred_element_type=jnp.float32)
            + b2_ref[...])                                             # (C, 1)

        # sSE: 1x1 conv (C -> 1) over spatial positions + sigmoid (MXU, f32 accumulate).
        s_pre = jnp.dot(ws_ref[...].astype(x.dtype), x,
                        preferred_element_type=jnp.float32) + bs_ref[0, 0]
        s_att = jax.nn.sigmoid(s_pre)                                  # (1, HW)

        # fused combine: x*cSE + x*sSE == x*(cSE+sSE); multiply in x's native dtype.
        att = c_att + s_att                                            # (C, HW) f32
        o_ref[...] = x * att.astype(x.dtype)

    return pl.pallas_call(
        kernel,
        out_shape=jax.ShapeDtypeStruct((N, C, HW), dtype),
        grid=(N,),
        in_specs=[
            pl.BlockSpec((mid, C), lambda n: (0, 0)),                  # w1
            pl.BlockSpec((mid, 1), lambda n: (0, 0)),                  # b1
            pl.BlockSpec((C, mid), lambda n: (0, 0)),                  # w2
            pl.BlockSpec((C, 1), lambda n: (0, 0)),                    # b2
            pl.BlockSpec((1, C), lambda n: (0, 0)),                    # ws
            pl.BlockSpec(memory_space=pltpu.MemorySpace.SMEM),         # bs (scalar)
            pl.BlockSpec((None, C, HW), lambda n: (n, 0, 0)),          # x
        ],
        out_specs=pl.BlockSpec((None, C, HW), lambda n: (n, 0, 0)),
        compiler_params=pltpu.CompilerParams(
            dimension_semantics=("parallel",),
            vmem_limit_bytes=int(vmem_budget)),
    )(params["w1"], params["b1"], params["w2"], params["b2"],
      params["ws"], params["bs"], x_flat)


# --------------------------------------------------------------------------------
# Two-pass fallback for slabs that do not fit VMEM.
# --------------------------------------------------------------------------------
def _scse_two_pass(x_flat, params, inv_hw, vmem_budget, tile_hw=None):
    N, C, HW = x_flat.shape
    dtype = x_flat.dtype
    elem_bytes = jnp.dtype(dtype).itemsize

    if tile_hw is None:
        # Bigger tiles than before (per-step overhead amortization); ~vmem_budget/12
        # per block leaves room for in+out double-buffering plus f32 intermediates.
        target = min(8 << 20, max(1 << 20, vmem_budget // 12))
        tile_hw = _choose_tile_hw(C, HW, elem_bytes, target)
    n_hw = int(pl.cdiv(HW, tile_hw))
    ragged = (HW % tile_hw) != 0

    block_bytes = C * tile_hw * max(elem_bytes, 4)
    vmem_limit = int(min(vmem_budget, max(32 << 20, 6 * block_bytes)))

    # ---- pass 1: per-(n, c) sums over HW (tiled, resident f32 accumulator) ----
    def chan_sum_kernel(x_ref, sum_ref):
        @pl.when(pl.program_id(1) == 0)
        def _():
            sum_ref[...] = jnp.zeros_like(sum_ref)

        xf = x_ref[...].astype(jnp.float32)                            # (C, tile_hw)
        if ragged:
            # Partial trailing block reads undefined columns -> mask them to zero.
            col = pl.program_id(1) * tile_hw + lax.broadcasted_iota(
                jnp.int32, xf.shape, 1)
            xf = jnp.where(col < HW, xf, 0.0)
        sum_ref[...] += jnp.sum(xf, axis=-1, keepdims=True)

    sums = pl.pallas_call(
        chan_sum_kernel,
        out_shape=jax.ShapeDtypeStruct((N, C, 1), jnp.float32),
        grid=(N, n_hw),
        in_specs=[pl.BlockSpec((None, C, tile_hw), lambda n, k: (n, 0, k))],
        out_specs=pl.BlockSpec((None, C, 1), lambda n, k: (n, 0, 0)),
        compiler_params=pltpu.CompilerParams(
            # HW axis MUST stay "arbitrary": it accumulates into a resident output.
            dimension_semantics=("parallel", "arbitrary"),
            vmem_limit_bytes=vmem_limit),
    )(x_flat)

    # ---- tiny cSE excitation (degenerate matvecs) in plain JAX ----
    mean = sums[:, :, 0] * inv_hw                                        # (N, C)
    h = jnp.maximum(mean @ params["w1"].T + params["b1"][:, 0], 0.0)     # (N, mid)
    c_att = jax.nn.sigmoid(h @ params["w2"].T + params["b2"][:, 0])      # (N, C)
    c_att = c_att[:, :, None].astype(jnp.float32)                        # (N, C, 1)

    # ---- pass 2: tiled fused apply: sSE + x*(cSE+sSE) ----
    def apply_kernel(c_att_ref, ws_ref, bs_ref, x_ref, o_ref):
        x = x_ref[...]                                                   # native dtype
        s_pre = jnp.dot(ws_ref[...].astype(x.dtype), x,
                        preferred_element_type=jnp.float32) + bs_ref[0, 0]
        s_att = jax.nn.sigmoid(s_pre)                                    # (1, tile_hw)
        att = c_att_ref[...] + s_att                                     # (C, tile_hw) f32
        o_ref[...] = x * att.astype(x.dtype)
        # (Garbage columns of a ragged last tile are computed but never written back.)

    out_flat = pl.pallas_call(
        apply_kernel,
        out_shape=jax.ShapeDtypeStruct((N, C, HW), dtype),
        grid=(N, n_hw),
        in_specs=[
            pl.BlockSpec((None, C, 1), lambda n, k: (n, 0, 0)),          # c_att
            pl.BlockSpec((1, C), lambda n, k: (0, 0)),                   # ws
            pl.BlockSpec(memory_space=pltpu.MemorySpace.SMEM),           # bs (scalar)
            pl.BlockSpec((None, C, tile_hw), lambda n, k: (n, 0, k)),    # x
        ],
        out_specs=pl.BlockSpec((None, C, tile_hw), lambda n, k: (n, 0, k)),
        compiler_params=pltpu.CompilerParams(
            dimension_semantics=("parallel", "parallel"),
            vmem_limit_bytes=vmem_limit),
    )(c_att, params["ws"], params["bs"], x_flat)

    return out_flat


# --------------------------------------------------------------------------------
# Public forward + pure-JAX reference + params
# --------------------------------------------------------------------------------
def scse_forward(x, params, *, force_two_pass=False, two_pass_tile_hw=None):
    """x: (N, C, H, W). params: dict of 1x1-conv weights/biases (see make_params)."""
    N, C, H, W = x.shape
    HW = H * W
    inv_hw = 1.0 / HW
    x_flat = x.reshape(N, C, HW)

    vmem_budget = _vmem_budget_bytes()
    slab_f32_bytes = C * HW * 4  # account for f32 intermediates inside the fused kernel

    if (not force_two_pass) and (8 * slab_f32_bytes <= vmem_budget):
        out_flat = _scse_fused(x_flat, params, inv_hw, vmem_budget)
    else:
        # TODO(synk): on v7x with N==1 the two-pass reduction could additionally split
        # HW across a leading size-2 "parallel" axis so both TensorCores stay busy.
        out_flat = _scse_two_pass(x_flat, params, inv_hw, vmem_budget,
                                  tile_hw=two_pass_tile_hw)
    return out_flat.reshape(N, C, H, W)


def scse_reference(x, params):
    """Pure-JAX reference mirroring the PyTorch forward."""
    mean = jnp.mean(x, axis=(2, 3))                                        # (N, C)
    h = jnp.maximum(mean @ params["w1"].T + params["b1"][:, 0], 0.0)       # (N, mid)
    c_att = jax.nn.sigmoid(h @ params["w2"].T + params["b2"][:, 0])        # (N, C)
    s = jnp.einsum("nchw,oc->nohw", x, params["ws"]) + params["bs"][0, 0]  # (N, 1, H, W)
    s_att = jax.nn.sigmoid(s)
    return x * c_att[:, :, None, None] + x * s_att


def make_params(key, in_channels, reduction=16):
    mid = in_channels // reduction
    assert mid >= 1, "in_channels // reduction must be >= 1"
    k1, k2, k3, k4, k5, k6 = jax.random.split(key, 6)
    # PyTorch Conv2d(.., kernel_size=1) weights are (out, in, 1, 1); drop the 1x1.
    return {
        "w1": jax.random.normal(k1, (mid, in_channels), jnp.float32) * 0.2,
        "b1": jax.random.normal(k2, (mid, 1), jnp.float32) * 0.1,
        "w2": jax.random.normal(k3, (in_channels, mid), jnp.float32) * 0.2,
        "b2": jax.random.normal(k4, (in_channels, 1), jnp.float32) * 0.1,
        "ws": jax.random.normal(k5, (1, in_channels), jnp.float32) * 0.2,
        "bs": jax.random.normal(k6, (1, 1), jnp.float32) * 0.1,
    }


if __name__ == "__main__":
    key = jax.random.PRNGKey(0)
    kx1, kx2, kx3, kp = jax.random.split(key, 4)

    N, C = 2, 32
    params = make_params(kp, C, reduction=16)   # hidden channels = 2

    def check(x, **kw):
        out = jax.block_until_ready(scse_forward(x, params, **kw))
        ref = scse_reference(x, params)
        assert out.shape == ref.shape
        err = float(jnp.max(jnp.abs(out - ref)))
        assert jnp.allclose(out, ref, atol=1e-5, rtol=1e-5), err

    # 1) fused single-pass path, HW a multiple of 128.
    check(jax.random.normal(kx1, (N, C, 16, 16), jnp.float32))
    # 2) fused single-pass path, HW = 100 (sub-lane-width, full-extent block).
    check(jax.random.normal(kx2, (N, C, 10, 10), jnp.float32))
    # 3) two-pass fallback with a ragged last HW tile (exercises in-kernel masking).
    check(jax.random.normal(kx3, (N, C, 12, 12), jnp.float32),
          force_two_pass=True, two_pass_tile_hw=128)
    # 4) two-pass fallback with aligned tiles.
    check(jax.random.normal(kx1, (N, C, 16, 16), jnp.float32),
          force_two_pass=True)

    print("KERNEL_OK")
</pallas_src>

<mosaic_0001>
module attributes {stable_mosaic.version = 11 : i64} {
  func.func @kernel(%arg0: i32, %arg1: memref<2x32xf32, #tpu.memory_space<vmem>>, %arg2: memref<2x1xf32, #tpu.memory_space<vmem>>, %arg3: memref<32x2xf32, #tpu.memory_space<vmem>>, %arg4: memref<32x1xf32, #tpu.memory_space<vmem>>, %arg5: memref<1x32xf32, #tpu.memory_space<vmem>>, %arg6: memref<1x1xf32, #tpu.memory_space<smem>>, %arg7: memref<1x32x256xf32, #tpu.memory_space<vmem>>, %arg8: memref<1x32x256xf32, #tpu.memory_space<vmem>>) attributes {dimension_semantics = [#tpu.dimension_semantics<parallel>], iteration_bounds = array<i64: 2>, scalar_prefetch = 0 : i64, scratch_operands = 0 : i64, tpu.core_type = #tpu.core_type<tc>, window_params = [{pipeline_mode = #tpu.pipeline_mode<synchronous>, transform_indices = @transform_0, window_bounds = array<i64: 2, 32>}, {pipeline_mode = #tpu.pipeline_mode<synchronous>, transform_indices = @transform_1, window_bounds = array<i64: 2, 1>}, {pipeline_mode = #tpu.pipeline_mode<synchronous>, transform_indices = @transform_2, window_bounds = array<i64: 32, 2>}, {pipeline_mode = #tpu.pipeline_mode<synchronous>, transform_indices = @transform_3, window_bounds = array<i64: 32, 1>}, {pipeline_mode = #tpu.pipeline_mode<synchronous>, transform_indices = @transform_4, window_bounds = array<i64: 1, 32>}, {transform_indices = @transform_5, window_bounds = array<i64: 1, 1>}, {transform_indices = @transform_6, window_bounds = array<i64: 1, 32, 256>}, {transform_indices = @transform_7, window_bounds = array<i64: 1, 32, 256>}]} {
    %c0 = arith.constant 0 : index
    %c0_0 = arith.constant 0 : index
    %c0_1 = arith.constant 0 : index
    %0 = vector.load %arg7[%c0, %c0_0, %c0_1] : memref<1x32x256xf32, #tpu.memory_space<vmem>>, vector<1x32x256xf32>
    %1 = vector.shape_cast %0 : vector<1x32x256xf32> to vector<32x256xf32>
    %cst = arith.constant dense<0.000000e+00> : vector<32xf32>
    %2 = vector.multi_reduction <add>, %1, %cst [1] : vector<32x256xf32> to vector<32xf32>
    %3 = vector.shape_cast %2 : vector<32xf32> to vector<32x1xf32>
    %cst_2 = arith.constant 3.906250e-03 : f32
    %4 = vector.broadcast %cst_2 : f32 to vector<32x1xf32>
    %5 = arith.mulf %3, %4 : vector<32x1xf32>
    %c0_3 = arith.constant 0 : index
    %c0_4 = arith.constant 0 : index
    %6 = vector.load %arg1[%c0_3, %c0_4] : memref<2x32xf32, #tpu.memory_space<vmem>>, vector<2x32xf32>
    %cst_5 = arith.constant dense<0.000000e+00> : vector<2x1xf32>
    %7 = tpu.matmul %6, %5, %cst_5 {dimension_numbers = #tpu.dot_dimension_numbers<[1], [0], [0], [1], [0, 0, 1, 1], [], []>} : vector<2x32xf32>, vector<32x1xf32>, vector<2x1xf32> -> vector<2x1xf32>
    %c0_6 = arith.constant 0 : index
    %c0_7 = arith.constant 0 : index
    %8 = vector.load %arg2[%c0_6, %c0_7] : memref<2x1xf32, #tpu.memory_space<vmem>>, vector<2x1xf32>
    %9 = arith.addf %7, %8 : vector<2x1xf32>
    %cst_8 = arith.constant 0.000000e+00 : f32
    %10 = vector.broadcast %cst_8 : f32 to vector<2x1xf32>
    %11 = arith.maximumf %9, %10 : vector<2x1xf32>
    %c0_9 = arith.constant 0 : index
    %c0_10 = arith.constant 0 : index
    %12 = vector.load %arg3[%c0_9, %c0_10] : memref<32x2xf32, #tpu.memory_space<vmem>>, vector<32x2xf32>
    %cst_11 = arith.constant dense<0.000000e+00> : vector<32x1xf32>
    %13 = tpu.matmul %12, %11, %cst_11 {dimension_numbers = #tpu.dot_dimension_numbers<[1], [0], [0], [1], [0, 0, 1, 1], [], []>} : vector<32x2xf32>, vector<2x1xf32>, vector<32x1xf32> -> vector<32x1xf32>
    %c0_12 = arith.constant 0 : index
    %c0_13 = arith.constant 0 : index
    %14 = vector.load %arg4[%c0_12, %c0_13] : memref<32x1xf32, #tpu.memory_space<vmem>>, vector<32x1xf32>
    %15 = arith.addf %13, %14 : vector<32x1xf32>
    %16 = arith.negf %15 : vector<32x1xf32>
    %17 = math.exp %16 : vector<32x1xf32>
    %cst_14 = arith.constant 1.000000e+00 : f32
    %18 = vector.broadcast %cst_14 : f32 to vector<32x1xf32>
    %19 = arith.addf %18, %17 : vector<32x1xf32>
    %20 = arith.divf %18, %19 : vector<32x1xf32>
    %c0_15 = arith.constant 0 : index
    %c0_16 = arith.constant 0 : index
    %21 = vector.load %arg5[%c0_15, %c0_16] : memref<1x32xf32, #tpu.memory_space<vmem>>, vector<1x32xf32>
    %cst_17 = arith.constant dense<0.000000e+00> : vector<1x256xf32>
    %22 = tpu.matmul %21, %1, %cst_17 {dimension_numbers = #tpu.dot_dimension_numbers<[1], [0], [0], [1], [0, 0, 1, 1], [], []>} : vector<1x32xf32>, vector<32x256xf32>, vector<1x256xf32> -> vector<1x256xf32>
    %c0_18 = arith.constant 0 : index
    %c0_19 = arith.constant 0 : index
    %23 = memref.load %arg6[%c0_18, %c0_19] : memref<1x1xf32, #tpu.memory_space<smem>>
    %24 = vector.broadcast %23 : f32 to vector<1x256xf32>
    %25 = arith.addf %22, %24 : vector<1x256xf32>
    %26 = arith.negf %25 : vector<1x256xf32>
    %27 = math.exp %26 : vector<1x256xf32>
    %cst_20 = arith.constant 1.000000e+00 : f32
    %28 = vector.broadcast %cst_20 : f32 to vector<1x256xf32>
    %29 = arith.addf %28, %27 : vector<1x256xf32>
    %30 = arith.divf %28, %29 : vector<1x256xf32>
    %31 = vector.broadcast %20 : vector<32x1xf32> to vector<32x256xf32>
    %32 = vector.broadcast %30 : vector<1x256xf32> to vector<32x256xf32>
    %33 = arith.addf %31, %32 : vector<32x256xf32>
    %34 = arith.mulf %1, %33 : vector<32x256xf32>
    %c0_21 = arith.constant 0 : index
    %c0_22 = arith.constant 0 : index
    %c0_23 = arith.constant 0 : index
    %35 = vector.load %arg8[%c0_21, %c0_22, %c0_23] : memref<1x32x256xf32, #tpu.memory_space<vmem>>, vector<1x32x256xf32>
    %36 = vector.shape_cast %35 : vector<1x32x256xf32> to vector<32x256xf32>
    %37 = vector.shape_cast %34 : vector<32x256xf32> to vector<1x32x256xf32>
    tpu.vector_store %arg8[%c0_21, %c0_22, %c0_23], %37 {strides = array<i32>} : memref<1x32x256xf32, #tpu.memory_space<vmem>>, vector<1x32x256xf32>,
    return
  }
  func.func @transform_0(%arg0: i32) -> (i32, i32) {
    %c0_i32 = arith.constant 0 : i32
    %c0_i32_0 = arith.constant 0 : i32
    %c0_i32_1 = arith.constant 0 : i32
    return %c0_i32, %c0_i32_0 : i32, i32
  }
  func.func @transform_1(%arg0: i32) -> (i32, i32) {
    %c0_i32 = arith.constant 0 : i32
    %c0_i32_0 = arith.constant 0 : i32
    %c0_i32_1 = arith.constant 0 : i32
    return %c0_i32, %c0_i32_0 : i32, i32
  }
  func.func @transform_2(%arg0: i32) -> (i32, i32) {
    %c0_i32 = arith.constant 0 : i32
    %c0_i32_0 = arith.constant 0 : i32
    %c0_i32_1 = arith.constant 0 : i32
    return %c0_i32, %c0_i32_0 : i32, i32
  }
  func.func @transform_3(%arg0: i32) -> (i32, i32) {
    %c0_i32 = arith.constant 0 : i32
    %c0_i32_0 = arith.constant 0 : i32
    %c0_i32_1 = arith.constant 0 : i32
    return %c0_i32, %c0_i32_0 : i32, i32
  }
  func.func @transform_4(%arg0: i32) -> (i32, i32) {
    %c0_i32 = arith.constant 0 : i32
    %c0_i32_0 = arith.constant 0 : i32
    %c0_i32_1 = arith.constant 0 : i32
    return %c0_i32, %c0_i32_0 : i32, i32
  }
  func.func @transform_5(%arg0: i32) -> (i32, i32) {
    %c0_i32 = arith.constant 0 : i32
    %c0_i32_0 = arith.constant 0 : i32
    %c0_i32_1 = arith.constant 0 : i32
    return %c0_i32, %c0_i32_0 : i32, i32
  }
  func.func @transform_6(%arg0: i32) -> (i32, i32, i32) {
    %c0_i32 = arith.constant 0 : i32
    %c0_i32_0 = arith.constant 0 : i32
    %c0_i32_1 = arith.constant 0 : i32
    return %arg0, %c0_i32, %c0_i32_0 : i32, i32, i32
  }
  func.func @transform_7(%arg0: i32) -> (i32, i32, i32) {
    %c0_i32 = arith.constant 0 : i32
    %c0_i32_0 = arith.constant 0 : i32
    %c0_i32_1 = arith.constant 0 : i32
    return %arg0, %c0_i32, %c0_i32_0 : i32, i32, i32
  }
}

</mosaic_0001>

<bundles_post_ra>
// kernel: tpu_custom_call.1
= control target key start
LH: loop header
LB: loop body
LE: loop exit
PB: predicated region body
PF: predicated region fallthrough
CT: control target
= control target key end

     0   :  { %s1159_s0 = inlined_call_operand.vmem [shape: f32[2,32], index: 0, kind: input, shape index: {}]   ;;  %s1160_s1 = inlined_call_operand.vmem [shape: f32[2,1], index: 1, kind: input, shape index: {}]   ;;  %s1161_s2 = inlined_call_operand.vmem [shape: f32[32,2], index: 2, kind: input, shape index: {}]   ;;  %s1162_s3 = inlined_call_operand.vmem [shape: f32[32,1], index: 3, kind: input, shape index: {}]   ;;  %s1163_s4 = inlined_call_operand.vmem [shape: f32[1,32], index: 4, kind: input, shape index: {}]   ;;  %s1164_s5 = inlined_call_operand.<no memory space> [shape: f32[1,1], index: 5, kind: input, shape index: {}]   ;;  %s1165_s6 = inlined_call_operand.hbm [shape: f32[2,32,256], index: 6, kind: input, shape index: {}]   ;;  %s1166_s7 = inlined_call_operand.hbm [shape: f32[2,32,256], index: 7, kind: output, shape index: {}]  }
   0x1   :  { %12 = sst [smem:[#allocation2]] %s1164_s5 }
   0x2   :  { %13 = vsyncpa [#allocation4], 0 }
   0x3   :  { %15 = vsyncpa [#allocation4 + $0x1], 0 }
   0x4   :  { %16 = vsyncpa [#allocation5], 0 }
   0x5   :  { %18 = vsyncpa [#allocation5 + $0x1], 0  ;;  %s955_s26 = smov 0   ;;  %s957_s27 = smov 0  }
   0x6   :  { %s959_s28 = smov 0   ;;  %s961_s29 = smov 0  }
   0x7 LB: > { %s976_s5 = sadd.s32 4294967295, %s905_s29   ;;  %s700_s30 = sadd.s32 4294967294, %s905_s29   ;;  %s905_s29 = sphi %s961_s29, %s1176_s29   ;;  %s901_s28 = sphi %s959_s28, %s1175_s28   ;;  %s897_s27 = sphi %s957_s27, %s1174_s27   ;;  %s893_s26 = sphi %s955_s26, %s1173_s26  }
   0x8   : > { %s980_s8 = sadd.s32 1, %s905_s29   ;;  %s157_s9 = sadd.s32 1, %s901_s28 }
   0x9   : > { %s154_s10 = ssub.s32 %s905_s29, %s980_s8  ;;  %p164_p0 = scmp.ne.s32.totalorder %s901_s28, %s897_s27 }
   0xa   : > { %p155_p1 = scmp.eq.s32.totalorder %s154_s10, 0  ;;  %p165_p2 = scmp.eq.s32.totalorder %s905_s29, 0 }
   0xb   : > { %p170_p3 = scmp.ne.s32.totalorder %s897_s27, %s893_s26  ;;  %p171_p4 = scmp.eq.s32.totalorder %s976_s5, 0 }
   0xc   : > { %s992_s11 = scalar_select %p155_p1, %s901_s28, %s157_s9  }
   0xd   : > { %p994_p5 = por %p165_p2, %p164_p0  ;;  %p998_p6 = por %p171_p4, %p170_p3 }
   0xe   : > { %p194_p7 = scmp.eq.s32.totalorder %s976_s5, 1  ;;  %p200_p8 = scmp.eq.s32.totalorder %s700_s30, 1 }
   0xf   : > { %p743_p10 = scmp.lt.s32.totalorder %s905_s29, 2  ;;  %s238_s16 = sand.u32 1, %s901_s28  }
  0x10   : > { %p1005_p11 = por %p194_p7, %p164_p0  ;;  %p1009_p12 = por %p200_p8, %p170_p3 }
  0x11   : > { %s728_s17 = sshll.u32 %s905_s29, 6  ;;  %s703_s18 = sshll.u32 %s238_s16, 6 }
  0x12   : > { %s247_s21 = scalar_lea.hbm %s1165_s6, %s728_s17  ;;  %s242_s23 = scalar_lea.vmem [#allocation3], %s703_s18 }
  0x13   : > { %s248_s22 = sshll.u32 %s247_s21, 4  ;;  %s250_s24 = sshll.u32 %s242_s23, 4  ;;  %s249_s22 = int_to_ptr.hbm [resolvable:$true] %s248_s22  ;;  %s251_s24 = int_to_ptr.vmem [resolvable:$true] %s250_s24 }
  0x14   : > { %p1020_p13 = pnand %p743_p10, %p994_p5  ;;  %p706_p0 = scmp.ge.s32.totalorder %s905_s29, 1 }
  0x15   : > { %p258_p1 = scmp.lt.s32.totalorder %s905_s29, 3  ;;  %s239_s30 = scalar_lea.sflag [#allocation4], %s238_s16 }
  0x16   : > { %s809_s9 = sshra.s32 %s249_s22, 4  ;;  %p813_p3 = pneg %p1020_p13  ;;  %s810_s9 = int_to_ptr.hbm [resolvable:$true] %s809_s9 }
  0x17   : > { %s811_s10 = scalar_lea.hbm %s810_s9, 64  ;;  %s816_s12 = scalar_lea.hbm %s1165_s6, 128 }
  0x18   : > { %p812_p2 = scmp.ne.s32.totalorder %s810_s9, %s811_s10  ;;  %p817_p5 = scmp.lt.s32.totalorder %s810_s9, %s1165_s6 }
  0x19   : > { %p818_p8 = scmp.lt.s32.totalorder %s816_s12, %s811_s10 }
  0x1a   : > { %p814_p4 = pnand %p813_p3, %p812_p2 }
  0x1b   : > { %p819_p10 = por %p818_p8, %p817_p5 }
  0x1c   : > { %p815_p7 = pneg %p814_p4 }
  0x1e   : > { %p820_p9 = pnand %p819_p10, %p815_p7 }
  0x20   : > { %823 = shalt.err (!%p820_p9)
}
  0x21   : > { %s907_s16 = smov 256   ;;  %s908_s21 = smov 16  }
  0x22   : > { %738 = dma.hbm_to_vmem [thread:$0]  (!%p1020_p13), %s249_s22, 1024, %s251_s24, %s239_s30, %s907_s16, %s907_s16, %s908_s21  }
  0x23   : > { %p259_p2 = pnand %p706_p0, %p258_p1 }
  0x24   : > { %s1041_s23 = sand.u32 (!%p259_p2), 1, %s897_s27  }
  0x25   : > { %262 = sbr.rel (%p259_p2) target bundleno = 604 (0x25c), region = 48  ;;  %s707_s9 = sshll.u32 (!%p259_p2), %s1041_s23, 6 }
  0x26   : > { %s265_s10 = scalar_lea.sflag (!%p259_p2), [#allocation4], %s1041_s23  ;;  %s268_s17 = scalar_lea.vmem (!%p259_p2), [#allocation3], %s707_s9 }
  0x2a   : > { %884 = dma.done.wait (%p998_p6), %s265_s10, 1024  }
  0x2b   : > { %886 = vsyncadd (%p998_p6), %s265_s10, 4294966272  ;;  %v1051_v0 = vld [vmem:[%s268_s17 + $0x30] sm:$0xff]  ;;  %v1053_v1 = vld [vmem:[%s268_s17 + $0x38] sm:$0xff]  ;;  %vm326_vm0 = vcmask 261120   ;;  %vm372_vm1 = vcmask 1041408   ;;  %vm359_vm2 = vcmask 15360  }
  0x2c   : > { %v1055_v2 = vld [vmem:[%s268_s17 + $0x10] sm:$0xff]  ;;  %v317_v3 = vadd.f32 %v1053_v1, %v1051_v0  ;;  %v1059_v4 = vld [vmem:[%s268_s17 + $0x18] sm:$0xff]  ;;  %499 = vmatpush.msra.mxu2 %v1051_v0  ;;  %519 = vmatpush.msra.mxu3 %v1053_v1  ;;  %v1065_v6 = vld [vmem:[%s268_s17 + $0x20] sm:$0xff]  ;;  %v909_v32 = vmov 0   ;;  %s482_s16 = sld [smem:[#allocation2]]  ;;  %s299_s21 = scalar_lea.vmem [#allocation6], %s707_s9 }
  0x2d   : > { %v311_v5 = vadd.f32 %v1059_v4, %v1055_v2  ;;  %v1067_v7 = vld [vmem:[%s268_s17 + $0x28] sm:$0xff]  ;;  %v1071_v8 = vld [vmem:[%s268_s17] sm:$0xff]  ;;  %v353_v28 = vld [vmem:[%s1161_s2 + $0x10] sm:$0xff]  ;;  %782 = vset.pattern.permute.xlu2 %v909_v32  ;;  %783 = vset.pattern.permute.xlu0 %v909_v32  ;;  %s729_s10 = sshll.u32 %s976_s5, 6  ;;  %s624_s22 = sshll.u32 %s299_s21, 4  ;;  %s625_s22 = int_to_ptr.vmem [resolvable:$true] %s624_s22 }
  0x2e   : > { %318 = vadd.xlane.f32.xlu0 %v317_v3  ;;  %500 = vmatpush.msra.mxu2 %v1065_v6  ;;  %v1073_v9 = vld [vmem:[%s268_s17 + $0x8] sm:$0xff]  ;;  %v314_v10 = vadd.f32 %v1067_v7, %v1065_v6  ;;  %v324_v20 = vld [vmem:[%s1159_s0] sm:$0x3]  ;;  %v354_v29 = vld [vmem:[%s1161_s2 + $0x18] sm:$0xff]  ;;  %s623_s13 = scalar_lea.hbm %s1166_s7, %s729_s10  ;;  %s612_s5 = scalar_lea.sflag [#allocation5], %s1041_s23 }
  0x2f   : > { %312 = vadd.xlane.f32.xlu1 %v311_v5  ;;  %520 = vmatpush.msra.mxu3 %v1067_v7  ;;  %v308_v11 = vadd.f32 %v1073_v9, %v1071_v8  ;;  %v481_v21 = vld [vmem:[%s1163_s4] sm:$0x1]  ;;  %v352_v27 = vld [vmem:[%s1161_s2 + $0x8] sm:$0xff]  ;;  %v357_v39 = vld [vmem:[%s1162_s3 + $0x10] sm:$0xff]  ;;  %s626_s24 = sshll.u32 %s623_s13, 4  ;;  %s859_s19 = scalar_lea.hbm %s1166_s7, 128  ;;  %s627_s24 = int_to_ptr.hbm [resolvable:$true] %s626_s24 }
  0x30   : > { %501 = vmatpush.msra.mxu2 %v1055_v2  ;;  %v325_v22 = vld [vmem:[%s1160_s1] sm:$0x3]  ;;  %v356_v31 = vld [vmem:[%s1162_s3 + $0x8] sm:$0xff]  ;;  %784 = vset.pattern.permute.xlu1 %v909_v32  ;;  %v358_v47 = vld [vmem:[%s1162_s3 + $0x18] sm:$0xff]  ;;  %s853_s25 = sshra.s32 %s627_s24, 4  ;;  %s854_s25 = int_to_ptr.hbm [resolvable:$true] %s853_s25 }
  0x31   : > { %521 = vmatpush.msra.mxu3 %v1059_v4  ;;  %v351_v26 = vld [vmem:[%s1161_s2] sm:$0xff]  ;;  %s855_s30 = scalar_lea.hbm %s854_s25, 64  ;;  %p860_p0 = scmp.lt.s32.totalorder %s854_s25, %s1166_s7 }
  0x32   : > { %502 = vmatpush.msra.mxu2 %v1071_v8  ;;  %v355_v30 = vld [vmem:[%s1162_s3] sm:$0xff]  ;;  %p856_p6 = scmp.ne.s32.totalorder %s854_s25, %s855_s30  ;;  %p861_p1 = scmp.lt.s32.totalorder %s859_s19, %s855_s30 }
  0x33   : > { %522 = vmatpush.msra.mxu3 %v1073_v9  ;;  %719 = vmatmul.msk.f32.vlgmr.msra.gmra.mxu2 %vm326_vm0, %v481_v21 }
  0x34   : > { %720 = vmatmul.msk.f32.vlgmr.msra.gmra.mxu3 %vm326_vm0, %v481_v21  ;;  %p857_p9 = pnand %p856_p6, %p1005_p11  ;;  %p862_p3 = por %p861_p1, %p860_p0 }
  0x36   : > { %315 = vadd.xlane.f32.xlu0 %v314_v10  ;;  %p858_p13 = pneg %p857_p9 }
  0x37   : > { %309 = vadd.xlane.f32.xlu1 %v308_v11 }
  0x38   : > { %p863_p4 = pnand %p862_p3, %p858_p13 }
  0xa1   : > { %v319_v12 = vpop.xlane.xlu0 %318 }
  0xa2   : > { %v323_v13 = vmul.f32 0.00390625, %v319_v12  ;;  %v313_v14 = vpop.xlane.xlu1 %312 }
  0xa3   : > { %v321_v18 = vmul.f32 0.00390625, %v313_v14 }
  0xa4   : > { %342 = vmatpush.msra.mxu0 %v323_v13 }
  0xa9   : > { %v316_v15 = vpop.xlane.xlu0 %315 }
  0xaa   : > { %v322_v16 = vmul.f32 0.00390625, %v316_v15  ;;  %v310_v17 = vpop.xlane.xlu1 %309 }
  0xab   : > { %v320_v19 = vmul.f32 0.00390625, %v310_v17 }
  0xac   : > { %343 = vmatpush.msra.mxu0 %v322_v16 }
  0xae   : > { %344 = vmatpush.msra.mxu0 %v321_v18 }
  0xb0   : > { %345 = vmatpush.msra.mxu0 %v320_v19 }
  0xb1   : > { %709 = vmatmul.msk.f32.vlgmr.msra.gmra.mxu0 %vm326_vm0, %v324_v20 }
 0x12e   : > { %v347_v23 = vpop.f32.mrf.mxu0 }
 0x12f   : > { %v348_v24 = vadd.f32 %v347_v23, %v325_v22 }
 0x131   : > { %v350_v25 = vmax.f32 %v348_v24, 0.0 }
 0x133   : > { %710 = vmatpush.msk.msrb.mxu0 %vm372_vm1, %v350_v25  ;;  %730 = vmatpush.msk.msra.mxu1 %vm372_vm1, %v350_v25 }
 0x134   : > { %711 = vmatmul.msk.f32.vlgmr.msrb.gmra.mxu0 %vm359_vm2, %v351_v26  ;;  %712 = vmatmul.msk.f32.vlgmr.msra.gmra.mxu1 %vm359_vm2, %v352_v27 }
 0x13c   : > { %713 = vmatmul.msk.f32.gmra.mxu1 %vm359_vm2, %v353_v28 }
 0x144   : > { %714 = vmatmul.msk.f32.gmra.mxu1 %vm359_vm2, %v354_v29 }
 0x1b1   : > { %v393_v33 = vpop.f32.mrf.mxu0  ;;  %v396_v34 = vpop.f32.mrf.mxu1 }
 0x1b2   : > { %v394_v35 = vadd.f32 %v393_v33, %v355_v30  ;;  %v397_v36 = vadd.f32 %v396_v34, %v356_v31 }
 0x1b4   : > { %v715_v37 = vmul.f32 -1.442695, %v394_v35  ;;  %v716_v38 = vmul.f32 -1.442695, %v397_v36 }
 0x1b6   : > { %785 = vpow2.f32 %v715_v37 }
 0x1b7   : > { %787 = vpow2.f32 %v716_v38 }
 0x1b9   : > { %v399_v40 = vpop.f32.mrf.mxu1 }
 0x1ba   : > { %v400_v41 = vadd.f32 %v399_v40, %v357_v39  ;;  %v483_v39 = vstv %s482_s16  ;;  %v504_v40 = vpop.f32.mrf.mxu2 }
 0x1bc   : > { %v786_v42 = vpop.eup %785  ;;  %v717_v43 = vmul.f32 -1.442695, %v400_v41  ;;  %v524_v41 = vpop.f32.mrf.mxu3 }
 0x1bd   : > { %v788_v44 = vpop.eup %787  ;;  %v417_v45 = vadd.f32 1.0, %v786_v42  ;;  %v505_v42 = vadd.f32 %v504_v40, %v483_v39 }
 0x1be   : > { %v418_v46 = vadd.f32 1.0, %v788_v44  ;;  %789 = vpow2.f32 %v717_v43  ;;  %v525_v43 = vadd.f32 %v524_v41, %v483_v39 }
 0x1bf   : > { %791 = vrcp.f32 %v417_v45  ;;  %vm426_vm3 = vweird.f32 %v417_v45  ;;  %v432_v56 = vand.u32 2147483648, %v417_v45  ;;  %v430_v58 = vand.u32 2147483647, %v417_v45 }
 0x1c0   : > { %793 = vrcp.f32 %v418_v46  ;;  %vm441_vm8 = vweird.f32 %v418_v46  ;;  %v447_v18 = vand.u32 2147483648, %v418_v46  ;;  %v445_v21 = vand.u32 2147483647, %v418_v46 }
 0x1c1   : > { %v402_v48 = vpop.f32.mrf.mxu1  ;;  %v433_v62 = vor.u32 1.1754944e-38, %v432_v56  ;;  %vm431_vm6 = vcmp.eq.f32.partialorder %v430_v58, 8.507059e+37  ;;  %v721_v44 = vmul.f32 -1.442695, %v505_v42 }
 0x1c2   : > { %v403_v49 = vadd.f32 %v402_v48, %v358_v47  ;;  %v448_v26 = vor.u32 1.1754944e-38, %v447_v18  ;;  %vm446_vm14 = vcmp.eq.f32.partialorder %v445_v21, 8.507059e+37 }
 0x1c4   : > { %v790_v50 = vpop.eup %789  ;;  %v718_v51 = vmul.f32 -1.442695, %v403_v49 }
 0x1c5   : > { %v792_v52 = vpop.eup %791  ;;  %v419_v53 = vadd.f32 1.0, %v790_v50 }
 0x1c6   : > { %v794_v54 = vpop.eup %793  ;;  %795 = vpow2.f32 %v718_v51  ;;  %v422_v55 = vmul.f32 %v792_v52, %v417_v45  ;;  %vm427_vm4 = vweird.f32 %v792_v52  ;;  %v722_v45 = vmul.f32 -1.442695, %v525_v43 }
 0x1c7   : > { %797 = vrcp.f32 %v419_v53  ;;  %v437_v59 = vmul.f32 %v794_v54, %v418_v46  ;;  %vm428_vm5 = vmor %vm426_vm3, %vm427_vm4  ;;  %vm442_vm7 = vweird.f32 %v794_v54  ;;  %v462_v17 = vand.u32 2147483648, %v419_v53 }
 0x1c8   : > { %v423_v57 = vsub.f32 1.0, %v422_v55  ;;  %v460_v20 = vand.u32 2147483647, %v419_v53  ;;  %vm443_vm10 = vmor %vm441_vm8, %vm442_vm7  ;;  %vm456_vm11 = vweird.f32 %v419_v53 }
 0x1c9   : > { %v438_v61 = vsub.f32 1.0, %v437_v59  ;;  %v463_v25 = vor.u32 1.1754944e-38, %v462_v17 }
 0x1ca   : > { %v424_v60 = vmul.f32 %v792_v52, %v423_v57  ;;  %vm461_vm13 = vcmp.eq.f32.partialorder %v460_v20, 8.507059e+37 }
 0x1cb   : > { %v439_v5 = vmul.f32 %v794_v54, %v438_v61 }
 0x1cc   : > { %v796_v63 = vpop.eup %795  ;;  %v425_v3 = vadd.f32 %v792_v52, %v424_v60 }
 0x1cd   : > { %v798_v10 = vpop.eup %797  ;;  %v420_v11 = vadd.f32 1.0, %v796_v63  ;;  %v440_v16 = vadd.f32 %v794_v54, %v439_v5 }
 0x1ce   : > { %v429_v12 = vsel %vm428_vm5, %v792_v52, %v425_v3  ;;  %v452_v13 = vmul.f32 %v798_v10, %v419_v53  ;;  %vm457_vm9 = vweird.f32 %v798_v10 }
 0x1cf   : > { %799 = vrcp.f32 %v420_v11  ;;  %v434_v14 = vsel %vm431_vm6, %v433_v62, %v429_v12  ;;  %v444_v23 = vsel %vm443_vm10, %v794_v54, %v440_v16  ;;  %vm458_vm12 = vmor %vm456_vm11, %vm457_vm9  ;;  %v477_v32 = vand.u32 2147483648, %v420_v11 }
 0x1d0   : > { %567 = vperm.xlu2 %782, %v434_v14   ;;  %v453_v15 = vsub.f32 1.0, %v452_v13  ;;  %v449_v30 = vsel %vm446_vm14, %v448_v26, %v444_v23  ;;  %v475_v34 = vand.u32 2147483647, %v420_v11  ;;  %vm471_vm0 = vweird.f32 %v420_v11 }
 0x1d1   : > { %v478_v36 = vor.u32 1.1754944e-38, %v477_v32  ;;  %801 = vpow2.f32 %v721_v44 }
 0x1d2   : > { %v454_v19 = vmul.f32 %v798_v10, %v453_v15  ;;  %vm476_vm2 = vcmp.eq.f32.partialorder %v475_v34, 8.507059e+37  ;;  %803 = vpow2.f32 %v722_v45 }
 0x1d4   : > { %v455_v22 = vadd.f32 %v798_v10, %v454_v19 }
 0x1d5   : > { %v800_v24 = vpop.eup %799 }
 0x1d6   : > { %v459_v27 = vsel %vm458_vm12, %v798_v10, %v455_v22  ;;  %v467_v28 = vmul.f32 %v800_v24, %v420_v11  ;;  %vm472_vm15 = vweird.f32 %v800_v24 }
 0x1d7   : > { %v464_v29 = vsel %vm461_vm13, %v463_v25, %v459_v27  ;;  %vm473_vm1 = vmor %vm471_vm0, %vm472_vm15  ;;  %v802_v46 = vpop.eup %801 }
 0x1d8   : > { %577 = vperm.xlu0 %783, %v464_v29   ;;  %572 = vperm.xlu2 %782, %v449_v30   ;;  %v468_v31 = vsub.f32 1.0, %v467_v28  ;;  %v804_v47 = vpop.eup %803  ;;  %v533_v48 = vadd.f32 1.0, %v802_v46 }
 0x1d9   : > { %v534_v49 = vadd.f32 1.0, %v804_v47 }
 0x1da   : > { %v469_v33 = vmul.f32 %v800_v24, %v468_v31  ;;  %805 = vrcp.f32 %v533_v48  ;;  %vm540_vm3 = vweird.f32 %v533_v48  ;;  %v546_v58 = vand.u32 2147483648, %v533_v48 }
 0x1db   : > { %807 = vrcp.f32 %v534_v49  ;;  %vm555_vm5 = vweird.f32 %v534_v49  ;;  %v561_v59 = vand.u32 2147483648, %v534_v49  ;;  %v544_v61 = vand.u32 2147483647, %v533_v48 }
 0x1dc   : > { %v470_v35 = vadd.f32 %v800_v24, %v469_v33  ;;  %v559_v63 = vand.u32 2147483647, %v534_v49  ;;  %v547_v3 = vor.u32 1.1754944e-38, %v546_v58 }
 0x1dd   : > { %v562_v5 = vor.u32 1.1754944e-38, %v561_v59  ;;  %vm545_vm9 = vcmp.eq.f32.partialorder %v544_v61, 8.507059e+37 }
 0x1de   : > { %v474_v37 = vsel %vm473_vm1, %v800_v24, %v470_v35  ;;  %vm560_vm10 = vcmp.eq.f32.partialorder %v559_v63, 8.507059e+37 }
 0x1df   : > { %v479_v38 = vsel %vm476_vm2, %v478_v36, %v474_v37 }
 0x1e0   : > { %582 = vperm.xlu1 %784, %v479_v38   ;;  %v806_v50 = vpop.eup %805 }
 0x1e1   : > { %v808_v51 = vpop.eup %807  ;;  %v536_v52 = vmul.f32 %v806_v50, %v533_v48  ;;  %vm541_vm4 = vweird.f32 %v806_v50 }
 0x1e2   : > { %v551_v53 = vmul.f32 %v808_v51, %v534_v49  ;;  %vm556_vm6 = vweird.f32 %v808_v51  ;;  %vm542_vm7 = vmor %vm540_vm3, %vm541_vm4 }
 0x1e3   : > { %v537_v54 = vsub.f32 1.0, %v536_v52  ;;  %vm557_vm8 = vmor %vm555_vm5, %vm556_vm6 }
 0x1e4   : > { %v552_v55 = vsub.f32 1.0, %v551_v53 }
 0x1e5   : > { %v538_v56 = vmul.f32 %v806_v50, %v537_v54 }
 0x1e6   : > { %v553_v57 = vmul.f32 %v808_v51, %v552_v55 }
 0x1e7   : > { %v539_v60 = vadd.f32 %v806_v50, %v538_v56 }
 0x1e8   : > { %v554_v62 = vadd.f32 %v808_v51, %v553_v57 }
 0x1e9   : > { %v543_v10 = vsel %vm542_vm7, %v806_v50, %v539_v60 }
 0x1ea   : > { %v558_v11 = vsel %vm557_vm8, %v808_v51, %v554_v62  ;;  %v548_v12 = vsel %vm545_vm9, %v547_v3, %v543_v10 }
 0x1eb   : > { %v563_v13 = vsel %vm560_vm10, %v562_v5, %v558_v11  ;;  %v585_v14 = vperm.slane %v548_v12, 0 }
 0x1ec   : > { %v586_v15 = vperm.slane %v563_v13, 0 }
 0x22a   : > { %v568_v16 = vpop.permute.xlu2 %567 }
 0x22b   : > { %v587_v17 = vadd.f32 %v585_v14, %v568_v16  ;;  %v588_v18 = vadd.f32 %v586_v15, %v568_v16 }
 0x22d   : > { %v595_v19 = vmul.f32 %v587_v17, %v1071_v8  ;;  %v596_v20 = vmul.f32 %v588_v18, %v1073_v9 }
 0x22f   : > { %603 = vst [vmem:[%s299_s21] sm:$0xff] %v595_v19 }
 0x230   : > { %604 = vst [vmem:[%s299_s21 + $0x8] sm:$0xff] %v596_v20 }
 0x232   : > { %v573_v21 = vpop.permute.xlu2 %572 }
 0x233   : > { %v589_v22 = vadd.f32 %v585_v14, %v573_v21  ;;  %v590_v23 = vadd.f32 %v586_v15, %v573_v21 }
 0x235   : > { %v597_v24 = vmul.f32 %v589_v22, %v1055_v2  ;;  %v598_v25 = vmul.f32 %v590_v23, %v1059_v4 }
 0x237   : > { %605 = vst [vmem:[%s299_s21 + $0x10] sm:$0xff] %v597_v24 }
 0x238   : > { %606 = vst [vmem:[%s299_s21 + $0x18] sm:$0xff] %v598_v25 }
 0x24a   : > { %v578_v26 = vpop.permute.xlu0 %577 }
 0x24b   : > { %v591_v27 = vadd.f32 %v585_v14, %v578_v26  ;;  %v592_v28 = vadd.f32 %v586_v15, %v578_v26 }
 0x24d   : > { %v599_v8 = vmul.f32 %v591_v27, %v1065_v6  ;;  %v600_v9 = vmul.f32 %v592_v28, %v1067_v7 }
 0x24f   : > { %607 = vst [vmem:[%s299_s21 + $0x20] sm:$0xff] %v599_v8 }
 0x250   : > { %608 = vst [vmem:[%s299_s21 + $0x28] sm:$0xff] %v600_v9 }
 0x252   : > { %v583_v2 = vpop.permute.xlu1 %582 }
 0x253   : > { %v593_v4 = vadd.f32 %v585_v14, %v583_v2  ;;  %v594_v29 = vadd.f32 %v586_v15, %v583_v2 }
 0x255   : > { %v601_v30 = vmul.f32 %v593_v4, %v1051_v0  ;;  %v602_v31 = vmul.f32 %v594_v29, %v1053_v1 }
 0x257   : > { %609 = vst [vmem:[%s299_s21 + $0x30] sm:$0xff] %v601_v30 }
 0x258   : > { %610 = vst [vmem:[%s299_s21 + $0x38] sm:$0xff] %v602_v31 }
 0x259   : > { %866 = shalt.err (!%p863_p4)
}
 0x25a   : > { %s910_s23 = smov 256   ;;  %s911_s21 = smov 16  }
 0x25b   : > { %733 = dma.vmem_to_hbm [thread:$0]  (%p1005_p11), %s625_s22, 1024, %s627_s24, %s612_s5, %s910_s23, %s910_s23, %s911_s21  }
 0x25c PF: > { %s641_s10 = sand.u32 1, %s893_s26   ;;  %p1172_p7 = scmp.ge.s32.totalorder %s905_s29, 2 }
 0x25d   : > { %s642_s9 = scalar_lea.sflag [#allocation5], %s641_s10 }
 0x25e   : > { %p740_p5 = pnand %p1172_p7, %p1009_p12 }
 0x260   : > { %p741_p8 = pneg %p740_p5 }
 0x262   : > { %888 = dma.done.wait (%p741_p8), %s642_s9, 1024  }
 0x263   : > { %890 = vsyncadd (%p741_p8), %s642_s9, 4294966272  ;;  %p21_p10 = scmp.ge.s32.totalorder %s980_s8, 4   ;;  %s1173_s26 = smov %s897_s27 }
 0x264   : > { %s1174_s27 = smov %s901_s28  ;;  %s1175_s28 = smov %s992_s11 }
 0x265   : > { %s1176_s29 = smov %s980_s8  ;;  %23 = sbr.rel (!%p21_p10) target bundleno = 7 (0x7), region = 93 }
 0x26a   :  { %648 = vsyncpa [#allocation4], 1 }
 0x26b   :  { %650 = vsyncpa [#allocation4 + $0x1], 1 }
 0x26c   :  { %651 = vsyncpa [#allocation5], 1 }
 0x26d   :  { %653 = vsyncpa [#allocation5 + $0x1], 1 }

</bundles_post_ra>
